<compile_context>
chip_gen: v5e
topology: v5e:2x2
jax: 0.10.0
libtpu: 0.0.40
codegen_flags: <defaults>
</compile_context>

<pallas_src>
import functools
from math import sqrt

import jax
import jax.numpy as jnp
from jax import lax
from jax.experimental import pallas as pl
from jax.experimental.pallas import tpu as pltpu


# ----------------------------- Pallas kernel -----------------------------

def attention_head_kernel(x_ref, wqkv_ref, bqkv_ref, o_ref, *,
                          batch, seq, head_dim, approx_recip):
    """Single invocation over the whole problem: x_ref (B,S,E), o_ref (B,S,D)."""
    B, S, D = batch, seq, head_dim
    E = x_ref.shape[-1]

    # Fused Q/K/V projection for ALL batch rows at once:
    # (B*S, E) @ (E, 3D) -> (B*S, 3D). Collapsing (B,S)->(B*S) only merges leading/sublane
    # dims (lane dim untouched), so it is a layout-cheap reshape and doubles MXU row fill.
    x2 = x_ref[...].reshape(B * S, E)
    qkv = jnp.dot(x2, wqkv_ref[...], preferred_element_type=jnp.float32) + bqkv_ref[0]

    scale = 1.0 / sqrt(float(D))
    # B is tiny and static -> fully unrolled at trace time; per-batch (S,S) attention.
    for b in range(B):
        row0 = b * S
        q = qkv[row0:row0 + S, 0 * D:1 * D]
        k = qkv[row0:row0 + S, 1 * D:2 * D]
        v = qkv[row0:row0 + S, 2 * D:3 * D]

        # scores = q @ k^T / sqrt(D); contract head dims directly (no materialized k.T).
        s = lax.dot_general(q, k, (((1,), (1,)), ((), ())),
                            preferred_element_type=jnp.float32) * scale

        # softmax(dim=-1), numerically stabilized.
        s = s - jnp.max(s, axis=-1, keepdims=True)
        p = jnp.exp(s)
        denom = jnp.sum(p, axis=-1, keepdims=True)
        if approx_recip:
            p = p * pl.reciprocal(denom, approx=True)   # EUP slot, ~2^-12 rel. error
        else:
            p = p / denom                               # exact divide

        # contextualized_emb = att_w @ v
        o_ref[b] = jnp.dot(p, v, preferred_element_type=jnp.float32)

    # TODO(synk): optional `mask` (the reference applies masked_fill AFTER softmax, i.e.
    #             rows are NOT renormalized) is not implemented; this kernel reproduces the
    #             default mask=None path. Do not fold a mask into the softmax above — it
    #             would silently disagree with the PyTorch module.


# ----------------------------- wrapper -----------------------------

def attention_head_forward(x, wqkv, bqkv, mask=None, *, approx_recip=True):
    """x: (B, S, E) f32; wqkv: (E, 3D) = [Wq^T | Wk^T | Wv^T]; bqkv: (1, 3D)."""
    if mask is not None:
        raise NotImplementedError("mask path not implemented (module default is mask=None)")
    B, S, E = x.shape
    D3 = wqkv.shape[1]
    D = D3 // 3

    kernel = functools.partial(attention_head_kernel,
                               batch=B, seq=S, head_dim=D, approx_recip=approx_recip)

    cost = pl.CostEstimate(
        flops=2 * B * S * E * D3 + 2 * B * S * S * D + 2 * B * S * S * D,
        transcendentals=B * S * S + B * S,          # exp + (approx) reciprocal
        bytes_accessed=4 * (B * S * E + E * D3 + D3 + B * S * D),
    )

    # Single step, no grid: every operand is copied whole into VMEM (a few KB total),
    # so there is no per-step pipeline overhead and exactly one DMA per array.
    vmem = pltpu.MemorySpace.VMEM
    return pl.pallas_call(
        kernel,
        out_shape=jax.ShapeDtypeStruct((B, S, D), jnp.float32),
        in_specs=[
            pl.BlockSpec(memory_space=vmem),   # x, whole (B,S,E) block resident
            pl.BlockSpec(memory_space=vmem),   # fused QKV weight (E, 3D), resident
            pl.BlockSpec(memory_space=vmem),   # fused QKV bias (1, 3D), resident
        ],
        out_specs=pl.BlockSpec(memory_space=vmem),
        cost_estimate=cost,
    )(x, wqkv, bqkv)


# ----------------------------- pure-JAX reference -----------------------------

def attention_head_reference(x, wqkv, bqkv):
    D = wqkv.shape[1] // 3
    qkv = jnp.einsum("bse,ef->bsf", x, wqkv) + bqkv[0]
    q, k, v = qkv[..., :D], qkv[..., D:2 * D], qkv[..., 2 * D:]
    s = jnp.einsum("bqd,bkd->bqk", q, k) / sqrt(float(D))
    p = jax.nn.softmax(s, axis=-1)
    return jnp.einsum("bqk,bkd->bqd", p, v)


# ----------------------------- main -----------------------------

if __name__ == "__main__":
    B, S, E = 2, 8, 32
    D = E  # linear_out_features defaults to emb_size in the module

    key = jax.random.PRNGKey(0)
    kx, kw, kb = jax.random.split(key, 3)
    x = jax.random.normal(kx, (B, S, E), jnp.float32)
    # Weights stored as (in_features, out_features) = transpose of nn.Linear.weight,
    # with Wq | Wk | Wv concatenated along the output axis (same for biases).
    wqkv = jax.random.normal(kw, (E, 3 * D), jnp.float32) * 0.02
    bqkv = jax.random.normal(kb, (1, 3 * D), jnp.float32) * 0.02

    out = attention_head_forward(x, wqkv, bqkv)
    jax.block_until_ready(out)

    ref = attention_head_reference(x, wqkv, bqkv)
    assert out.shape == (B, S, D)
    assert bool(jnp.allclose(out, ref, atol=5e-3, rtol=5e-2)), (
        "max abs err = %g" % float(jnp.max(jnp.abs(out - ref))))
    print("KERNEL_OK")
</pallas_src>

<mosaic_0001>
module attributes {stable_mosaic.version = 11 : i64} {
  func.func @attention_head_kernel(%arg0: memref<2x8x32xf32, #tpu.memory_space<vmem>>, %arg1: memref<32x96xf32, #tpu.memory_space<vmem>>, %arg2: memref<1x96xf32, #tpu.memory_space<vmem>>, %arg3: memref<2x8x32xf32, #tpu.memory_space<vmem>>) attributes {dimension_semantics = [], scalar_prefetch = 0 : i64, scratch_operands = 0 : i64, tpu.core_type = #tpu.core_type<tc>} {
    %c0 = arith.constant 0 : index
    %c0_0 = arith.constant 0 : index
    %c0_1 = arith.constant 0 : index
    %0 = vector.load %arg0[%c0, %c0_0, %c0_1] : memref<2x8x32xf32, #tpu.memory_space<vmem>>, vector<2x8x32xf32>
    %1 = vector.shape_cast %0 : vector<2x8x32xf32> to vector<16x32xf32>
    %c0_2 = arith.constant 0 : index
    %c0_3 = arith.constant 0 : index
    %2 = vector.load %arg1[%c0_2, %c0_3] : memref<32x96xf32, #tpu.memory_space<vmem>>, vector<32x96xf32>
    %cst = arith.constant dense<0.000000e+00> : vector<16x96xf32>
    %3 = tpu.matmul %1, %2, %cst {dimension_numbers = #tpu.dot_dimension_numbers<[1], [0], [0], [1], [0, 0, 1, 1], [], []>} : vector<16x32xf32>, vector<32x96xf32>, vector<16x96xf32> -> vector<16x96xf32>
    %c0_4 = arith.constant 0 : index
    %c0_5 = arith.constant 0 : index
    %4 = vector.load %arg2[%c0_4, %c0_5] : memref<1x96xf32, #tpu.memory_space<vmem>>, vector<1x96xf32>
    %5 = vector.shape_cast %4 : vector<1x96xf32> to vector<96xf32>
    %6 = vector.shape_cast %5 : vector<96xf32> to vector<1x96xf32>
    %7 = vector.broadcast %6 : vector<1x96xf32> to vector<16x96xf32>
    %8 = arith.addf %3, %7 : vector<16x96xf32>
    %9 = vector.extract_strided_slice %8 {offsets = [0, 0], sizes = [8, 32], strides = [1, 1]} : vector<16x96xf32> to vector<8x32xf32>
    %10 = vector.extract_strided_slice %8 {offsets = [0, 32], sizes = [8, 32], strides = [1, 1]} : vector<16x96xf32> to vector<8x32xf32>
    %11 = vector.extract_strided_slice %8 {offsets = [0, 64], sizes = [8, 32], strides = [1, 1]} : vector<16x96xf32> to vector<8x32xf32>
    %cst_6 = arith.constant dense<0.000000e+00> : vector<8x8xf32>
    %12 = tpu.matmul %9, %10, %cst_6 {dimension_numbers = #tpu.dot_dimension_numbers<[1], [1], [0], [0], [0, 0, 1, 0], [], []>} : vector<8x32xf32>, vector<8x32xf32>, vector<8x8xf32> -> vector<8x8xf32>
    %cst_7 = arith.constant 0.176776692 : f32
    %13 = vector.broadcast %cst_7 : f32 to vector<8x8xf32>
    %14 = arith.mulf %12, %13 : vector<8x8xf32>
    %cst_8 = arith.constant dense<0xFF800000> : vector<8xf32>
    %15 = vector.multi_reduction <maximumf>, %14, %cst_8 [1] : vector<8x8xf32> to vector<8xf32>
    %16 = vector.shape_cast %15 : vector<8xf32> to vector<8x1xf32>
    %17 = vector.broadcast %16 : vector<8x1xf32> to vector<8x8xf32>
    %18 = arith.subf %14, %17 : vector<8x8xf32>
    %19 = math.exp %18 : vector<8x8xf32>
    %cst_9 = arith.constant dense<0.000000e+00> : vector<8xf32>
    %20 = vector.multi_reduction <add>, %19, %cst_9 [1] : vector<8x8xf32> to vector<8xf32>
    %21 = vector.shape_cast %20 : vector<8xf32> to vector<8x1xf32>
    %22 = tpu.reciprocal %21 {approx = true} : vector<8x1xf32> -> vector<8x1xf32>
    %23 = vector.broadcast %22 : vector<8x1xf32> to vector<8x8xf32>
    %24 = arith.mulf %19, %23 : vector<8x8xf32>
    %cst_10 = arith.constant dense<0.000000e+00> : vector<8x32xf32>
    %25 = tpu.matmul %24, %11, %cst_10 {dimension_numbers = #tpu.dot_dimension_numbers<[1], [0], [0], [1], [0, 0, 1, 1], [], []>} : vector<8x8xf32>, vector<8x32xf32>, vector<8x32xf32> -> vector<8x32xf32>
    %c0_11 = arith.constant 0 : index
    %c0_12 = arith.constant 0 : index
    %c0_13 = arith.constant 0 : index
    %26 = vector.load %arg3[%c0_11, %c0_12, %c0_13] : memref<2x8x32xf32, #tpu.memory_space<vmem>>, vector<1x8x32xf32>
    %27 = vector.shape_cast %26 : vector<1x8x32xf32> to vector<8x32xf32>
    %28 = vector.shape_cast %25 : vector<8x32xf32> to vector<1x8x32xf32>
    tpu.vector_store %arg3[%c0_11, %c0_12, %c0_13], %28 {strides = array<i32>} : memref<2x8x32xf32, #tpu.memory_space<vmem>>, vector<1x8x32xf32>,
    %29 = vector.extract_strided_slice %8 {offsets = [8, 0], sizes = [8, 32], strides = [1, 1]} : vector<16x96xf32> to vector<8x32xf32>
    %30 = vector.extract_strided_slice %8 {offsets = [8, 32], sizes = [8, 32], strides = [1, 1]} : vector<16x96xf32> to vector<8x32xf32>
    %31 = vector.extract_strided_slice %8 {offsets = [8, 64], sizes = [8, 32], strides = [1, 1]} : vector<16x96xf32> to vector<8x32xf32>
    %cst_14 = arith.constant dense<0.000000e+00> : vector<8x8xf32>
    %32 = tpu.matmul %29, %30, %cst_14 {dimension_numbers = #tpu.dot_dimension_numbers<[1], [1], [0], [0], [0, 0, 1, 0], [], []>} : vector<8x32xf32>, vector<8x32xf32>, vector<8x8xf32> -> vector<8x8xf32>
    %cst_15 = arith.constant 0.176776692 : f32
    %33 = vector.broadcast %cst_15 : f32 to vector<8x8xf32>
    %34 = arith.mulf %32, %33 : vector<8x8xf32>
    %cst_16 = arith.constant dense<0xFF800000> : vector<8xf32>
    %35 = vector.multi_reduction <maximumf>, %34, %cst_16 [1] : vector<8x8xf32> to vector<8xf32>
    %36 = vector.shape_cast %35 : vector<8xf32> to vector<8x1xf32>
    %37 = vector.broadcast %36 : vector<8x1xf32> to vector<8x8xf32>
    %38 = arith.subf %34, %37 : vector<8x8xf32>
    %39 = math.exp %38 : vector<8x8xf32>
    %cst_17 = arith.constant dense<0.000000e+00> : vector<8xf32>
    %40 = vector.multi_reduction <add>, %39, %cst_17 [1] : vector<8x8xf32> to vector<8xf32>
    %41 = vector.shape_cast %40 : vector<8xf32> to vector<8x1xf32>
    %42 = tpu.reciprocal %41 {approx = true} : vector<8x1xf32> -> vector<8x1xf32>
    %43 = vector.broadcast %42 : vector<8x1xf32> to vector<8x8xf32>
    %44 = arith.mulf %39, %43 : vector<8x8xf32>
    %cst_18 = arith.constant dense<0.000000e+00> : vector<8x32xf32>
    %45 = tpu.matmul %44, %31, %cst_18 {dimension_numbers = #tpu.dot_dimension_numbers<[1], [0], [0], [1], [0, 0, 1, 1], [], []>} : vector<8x8xf32>, vector<8x32xf32>, vector<8x32xf32> -> vector<8x32xf32>
    %c1 = arith.constant 1 : index
    %c0_19 = arith.constant 0 : index
    %c0_20 = arith.constant 0 : index
    %46 = vector.load %arg3[%c1, %c0_19, %c0_20] : memref<2x8x32xf32, #tpu.memory_space<vmem>>, vector<1x8x32xf32>
    %47 = vector.shape_cast %46 : vector<1x8x32xf32> to vector<8x32xf32>
    %48 = vector.shape_cast %45 : vector<8x32xf32> to vector<1x8x32xf32>
    tpu.vector_store %arg3[%c1, %c0_19, %c0_20], %48 {strides = array<i32>} : memref<2x8x32xf32, #tpu.memory_space<vmem>>, vector<1x8x32xf32>,
    return
  }
}

</mosaic_0001>

<bundles_post_ra>
// kernel: tpu_custom_call.1
= control target key start
LH: loop header
LB: loop body
LE: loop exit
PB: predicated region body
PF: predicated region fallthrough
CT: control target
= control target key end

     0   :  { %8 = vsyncpa [#allocation3], 0  ;;  %s405_s0 = inlined_call_operand.hbm [shape: f32[2,8,32], index: 0, kind: input, shape index: {}]   ;;  %s406_s1 = inlined_call_operand.hbm [shape: f32[32,96], index: 1, kind: input, shape index: {}]   ;;  %s407_s2 = inlined_call_operand.vmem [shape: f32[1,96], index: 2, kind: input, shape index: {}]   ;;  %s408_s3 = inlined_call_operand.hbm [shape: f32[2,8,32], index: 3, kind: output, shape index: {}]  }
   0x1   :  { %9 = vsyncpa [#allocation6], 0 }
   0x2   :  { %10 = vsyncpa [#allocation4], 0  ;;  %s15_s14 = sshll.u32 %s405_s0, 4  ;;  %s343_s15 = smov [#allocation2]   ;;  %s16_s14 = int_to_ptr.hbm [resolvable:$true] %s15_s14 }
   0x3   :  { %s17_s16 = sshll.u32 %s343_s15, 4  ;;  %s28_s19 = sshll.u32 %s406_s1, 4  ;;  %s18_s16 = int_to_ptr.vmem [resolvable:$true] %s17_s16  ;;  %s29_s19 = int_to_ptr.hbm [resolvable:$true] %s28_s19 }
   0x4   :  { %s344_s20 = smov 128   ;;  %s345_s21 = smov 8  }
   0x5   :  { %23 = dma.hbm_to_vmem [thread:$0]  %s16_s14, 256, %s18_s16, [#allocation3], %s344_s20, %s344_s20, %s345_s21  }
   0x6   :  { %s346_s22 = smov [#allocation5]  }
   0x7   :  { %s30_s23 = sshll.u32 %s346_s22, 4  ;;  %s31_s23 = int_to_ptr.vmem [resolvable:$true] %s30_s23 }
   0x8   :  { %36 = dma.hbm_to_vmem [thread:$0]  %s29_s19, 512, %s31_s23, [#allocation6], %s344_s20, %s344_s20, %s345_s21  }
   0x9   :  { %337 = dma.done.wait [#allocation3], 256  }
   0xa   :  { %338 = vsyncadd [#allocation3], 4294967040 }
   0xb   :  { %339 = dma.done.wait [#allocation6], 512  }
   0xc   :  { %340 = vsyncadd [#allocation6], 4294966784  ;;  %v52_v0 = vld [vmem:[#allocation5 + $0x18] sm:$0xff]  ;;  %v51_v1 = vld [vmem:[#allocation5 + $0x10] sm:$0xff]  ;;  %vm57_vm0 = vcmask 261120   ;;  %s347_s24 = smov 96  }
   0xd   :  { %76 = vmatpush.msra.mxu0 %v52_v0  ;;  %v50_v2 = vld [vmem:[#allocation5 + $0x8] sm:$0xff]  ;;  %v49_v3 = vld [vmem:[#allocation5] sm:$0xff]  ;;  %v47_v4 = vld [vmem:[#allocation2] sm:$0xff]  ;;  %s348_s25 = smov 64   ;;  %vm115_vm1 = vcmask 64512   ;;  %s227_s29 = sshll.u32 %s408_s3, 4  ;;  %s228_s29 = int_to_ptr.hbm [resolvable:$true] %s227_s29 }
   0xe   :  { %v48_v5 = vld [vmem:[#allocation2 + $0x8] sm:$0xff]  ;;  %v256_v6 = vld [vmem:[%s407_s2] ss:$0 sm:$0xff]  ;;  %s349_s2 = smov [#allocation7]  }
   0xf   :  { %77 = vmatpush.msra.mxu0 %v51_v1  ;;  %s225_s26 = sshll.u32 %s349_s2, 4  ;;  %s226_s26 = int_to_ptr.vmem [resolvable:$true] %s225_s26 }
  0x11   :  { %78 = vmatpush.msra.mxu0 %v50_v2 }
  0x13   :  { %79 = vmatpush.msra.mxu0 %v49_v3 }
  0x14   :  { %241 = vmatmul.msk.f32.vlgmr.msra.gmra.mxu0 %vm57_vm0, %v47_v4 }
  0x1c   :  { %242 = vmatmul.msk.f32.gmra.mxu0 %vm57_vm0, %v48_v5 }
  0x91   :  { %v81_v7 = vpop.f32.mrf.mxu0 }
  0x92   :  { %v82_v8 = vadd.f32 %v256_v6, %v81_v7 }
  0x94   :  { %88 = vrot.lane.b32.xlu0 %v82_v8, %s347_s24 }
  0x99   :  { %v84_v9 = vpop.f32.mrf.mxu0 }
  0x9a   :  { %v85_v10 = vadd.f32 %v256_v6, %v84_v9 }
  0x9c   :  { %155 = vrot.lane.b32.xlu0 %v85_v10, %s347_s24 }
  0xa4   :  { %127 = vrot.lane.b32.xlu0 %v82_v8, %s348_s25 }
 0x106   :  { %v89_v11 = vpop.permute.xlu0 %88 }
 0x107   :  { %243 = vmatpush.xpose.msk.msra.mxu1 %vm57_vm0, %v89_v11 }
 0x10a   :  { %244 = vmatmul.msk.f32.vlgmr.msra.gmra.mxu1 %vm57_vm0, %v82_v8 }
 0x10e   :  { %v156_v12 = vpop.permute.xlu0 %155 }
 0x10f   :  { %246 = vmatpush.xpose.msk.msra.mxu3 %vm57_vm0, %v156_v12 }
 0x112   :  { %247 = vmatmul.msk.f32.vlgmr.msra.gmra.mxu3 %vm57_vm0, %v85_v10 }
 0x116   :  { %v128_v13 = vpop.permute.xlu0 %127 }
 0x117   :  { %148 = vmatpush.msra.mxu2 %v128_v13 }
 0x187   :  { %v111_v14 = vpop.f32.mrf.mxu1 }
 0x188   :  { %v114_v15 = vmul.f32 0.17677669, %v111_v14 }
 0x18a   :  { %v116_v16 = vsel %vm115_vm1, %v114_v15, -inf }
 0x18b   :  { %117 = vmax.xlane.f32.xlu1 %v116_v16 }
 0x195   :  { %v178_v17 = vpop.f32.mrf.mxu3 }
 0x196   :  { %v181_v18 = vmul.f32 0.17677669, %v178_v17 }
 0x198   :  { %v182_v19 = vsel %vm115_vm1, %v181_v18, -inf }
 0x199   :  { %183 = vmax.xlane.f32.xlu1 %v182_v19 }
 0x1b2   :  { %193 = vrot.lane.b32.xlu1 %v85_v10, %s348_s25 }
 0x1fe   :  { %v118_v20 = vpop.xlane.xlu1 %117 }
 0x1ff   :  { %v119_v21 = vsub.f32 %v114_v15, %v118_v20 }
 0x201   :  { %v120_v22 = vmul.f32 1.442695, %v119_v21 }
 0x203   :  { %257 = vpow2.f32 %v120_v22 }
 0x209   :  { %v258_v23 = vpop.eup %257 }
 0x20a   :  { %v122_v24 = vsel %vm115_vm1, %v258_v23, 0.0 }
 0x20b   :  { %123 = vadd.xlane.f32.xlu2 %v122_v24 }
 0x20c   :  { %v184_v25 = vpop.xlane.xlu1 %183 }
 0x20d   :  { %v185_v26 = vsub.f32 %v181_v18, %v184_v25 }
 0x20f   :  { %v186_v27 = vmul.f32 1.442695, %v185_v26 }
 0x211   :  { %259 = vpow2.f32 %v186_v27 }
 0x217   :  { %v260_v28 = vpop.eup %259 }
 0x218   :  { %v188_v29 = vsel %vm115_vm1, %v260_v28, 0.0 }
 0x219   :  { %189 = vadd.xlane.f32.xlu2 %v188_v29 }
 0x224   :  { %v194_v30 = vpop.permute.xlu1 %193 }
 0x225   :  { %214 = vmatpush.msrb.mxu2 %v194_v30 }
 0x27e   :  { %v124_v31 = vpop.xlane.xlu2 %123 }
 0x27f   :  { %261 = vrcp.f32 %v124_v31 }
 0x285   :  { %v262_v32 = vpop.eup %261 }
 0x286   :  { %v126_v33 = vmul.f32 %v262_v32, %v258_v23 }
 0x288   :  { %245 = vmatmul.msk.f32.vlgmr.msra.gmra.mxu2 %vm115_vm1, %v126_v33 }
 0x28c   :  { %v190_v34 = vpop.xlane.xlu2 %189 }
 0x28d   :  { %263 = vrcp.f32 %v190_v34 }
 0x293   :  { %v264_v35 = vpop.eup %263 }
 0x294   :  { %v192_v36 = vmul.f32 %v264_v35, %v260_v28 }
 0x296   :  { %248 = vmatmul.msk.f32.vlgmr.msrb.gmra.mxu2 %vm115_vm1, %v192_v36 }
 0x30b   :  { %v150_v37 = vpop.f32.mrf.mxu2 }
 0x30c   :  { %153 = vst.msk [vmem:[#allocation7] sm:$0xff] %vm57_vm0, %v150_v37 }
 0x319   :  { %v216_v38 = vpop.f32.mrf.mxu2 }
 0x31a   :  { %220 = vst.msk [vmem:[#allocation7 + $0x8] sm:$0xff] %vm57_vm0, %v216_v38 }
 0x31b   :  { %233 = dma.vmem_to_hbm [thread:$0]  %s226_s26, 256, %s228_s29, [#allocation4], %s344_s20, %s344_s20, %s345_s21  }
 0x31c   :  { %341 = dma.done.wait [#allocation4], 256  }
 0x31d   :  { %342 = vsyncadd [#allocation4], 4294967040 }
 0x31e   :  { %238 = vsyncpa [#allocation3], 1 }
 0x31f   :  { %239 = vsyncpa [#allocation6], 1 }
 0x320   :  { %240 = vsyncpa [#allocation4], 1 }

</bundles_post_ra>
